<compile_context>
chip_gen: v7x
topology: tpu7x:2x2x1
jax: 0.10.0
libtpu: 0.0.40
codegen_flags: <defaults>
</compile_context>

<pallas_src>
import jax
import jax.numpy as jnp
from jax.experimental import pallas as pl
from jax.experimental.pallas import tpu as pltpu

NEGATIVE_SLOPE = 0.13


def _idiv(x, n: int):
    """Integer divide a (1, O) i32 vector by a compile-time constant (shift if pow2)."""
    if n & (n - 1) == 0:
        return x >> (n.bit_length() - 1)
    return x // n  # fallback for non-power-of-two extents


def _tap_vector(w_ref, kd, kh, kw):
    """(1, O) tap value vector from 8 SMEM taps via a 3-level binary select tree.

    w_ref: SMEM (8,) f32, taps flattened row-major over (kd, kh, kw).
    kd, kh, kw: (1, O) int32 vectors with values in {0, 1}.
    """
    bw = kw == 1
    a00 = jnp.where(bw, w_ref[1], w_ref[0])   # kd=0, kh=0
    a01 = jnp.where(bw, w_ref[3], w_ref[2])   # kd=0, kh=1
    a10 = jnp.where(bw, w_ref[5], w_ref[4])   # kd=1, kh=0
    a11 = jnp.where(bw, w_ref[7], w_ref[6])   # kd=1, kh=1
    bh = kh == 1
    a0 = jnp.where(bh, a01, a00)
    a1 = jnp.where(bh, a11, a10)
    return jnp.where(kd == 1, a1, a0)


def model_forward(x, w1, b1, w2, b2):
    """x: (N, 1, D, H, W) f32;  w1, w2: (1,1,2,2,2);  b1, b2: (1,)."""
    N, C, D, H, W = x.shape
    assert C == 1
    K1 = D * H * W
    D2, H2, W2 = 4 * D, 4 * H, 4 * W          # final output spatial extents
    O2 = D2 * H2 * W2                          # flattened output columns (lane axis)

    x_flat = x.reshape(N, K1).astype(jnp.float32)
    w1_flat = w1.reshape(8).astype(jnp.float32)
    w2_flat = w2.reshape(8).astype(jnp.float32)
    b1_s = b1.reshape(1).astype(jnp.float32)
    b2_s = b2.reshape(1).astype(jnp.float32)

    def kernel(x_ref, w1_ref, b1_ref, w2_ref, b2_ref, o_ref):
        # Column index -> output coordinates (od, oh, ow) over (D2, H2, W2).
        j = jax.lax.broadcasted_iota(jnp.int32, (1, O2), 1)
        od = _idiv(j, H2 * W2)
        rem = j - od * (H2 * W2)
        oh = _idiv(rem, W2)
        ow = rem - oh * W2

        # Intermediate (t4) coordinates and conv2 tap bits.
        md, mh, mw = od >> 1, oh >> 1, ow >> 1
        c2 = _tap_vector(w2_ref, od & 1, oh & 1, ow & 1)        # (1, O2)
        # Input coordinates and conv1 tap bits.
        id_, ih, iw = md >> 1, mh >> 1, mw >> 1
        c1 = _tap_vector(w1_ref, md & 1, mh & 1, mw & 1)        # (1, O2)

        # Parent input column for every output column (flat over (D, H, W)).
        p = (id_ * H + ih) * W + iw                              # (1, O2) in [0, K1)

        # K1-way gather of x columns as a short compare+select chain.
        # TODO(synk): for large D*H*W switch to a column-tiled / matmul form; K1 is tiny here.
        xg = jnp.broadcast_to(x_ref[:, 0:1], (x_ref.shape[0], O2))
        for k in range(1, K1):
            xg = jnp.where(p == k, x_ref[:, k:k + 1], xg)        # (N, O2)

        # Fused conv1 -> where -> conv2 -> where, all elementwise.
        t1 = xg * c1 + b1_ref[0]
        t4 = jnp.where(t1 <= 0.9, t1, t1 * NEGATIVE_SLOPE)
        t5 = t4 * c2 + b2_ref[0]
        # TODO(synk): the original torch.where(t6, t4, t7) mixes shapes (N,1,4,4,4) and
        # (N,1,8,8,8) and raises at runtime in PyTorch; we implement the only
        # broadcast-valid reading: where(t5 <= 0.708, t5, t5 * negative_slope).
        o_ref[...] = jnp.where(t5 <= 0.708, t5, t5 * NEGATIVE_SLOPE)

    out_flat = pl.pallas_call(
        kernel,
        out_shape=jax.ShapeDtypeStruct((N, O2), jnp.float32),
        in_specs=[
            pl.BlockSpec(memory_space=pltpu.MemorySpace.VMEM),   # x (whole array)
            pl.BlockSpec(memory_space=pltpu.MemorySpace.SMEM),   # w1 taps (8,)
            pl.BlockSpec(memory_space=pltpu.MemorySpace.SMEM),   # b1 (1,)
            pl.BlockSpec(memory_space=pltpu.MemorySpace.SMEM),   # w2 taps (8,)
            pl.BlockSpec(memory_space=pltpu.MemorySpace.SMEM),   # b2 (1,)
        ],
        out_specs=pl.BlockSpec(memory_space=pltpu.MemorySpace.VMEM),
        cost_estimate=pl.CostEstimate(
            flops=6 * N * O2,                       # 2 FMAs + 2 cmp/mul per output element
            transcendentals=0,
            bytes_accessed=4 * (N * K1 + N * O2 + 18),
        ),
    )(x_flat, w1_flat, b1_s, w2_flat, b2_s)

    return out_flat.reshape(N, 1, D2, H2, W2)


model_forward_jit = jax.jit(model_forward)


def _convT_ref(x4, w, b):
    """Pure-JAX reference: x4 (N,D,H,W), w (2,2,2), b scalar -> (N,2D,2H,2W)."""
    y = x4[:, :, None, :, None, :, None] * w[None, None, :, None, :, None, :]
    N, D, _, H, _, W, _ = y.shape
    return y.reshape(N, 2 * D, 2 * H, 2 * W) + b


def _model_ref(x, w1, b1, w2, b2):
    N, _, D, H, W = x.shape
    x4 = x.reshape(N, D, H, W)
    t1 = _convT_ref(x4, w1.reshape(2, 2, 2), b1[0])
    t4 = jnp.where(t1 <= 0.9, t1, t1 * NEGATIVE_SLOPE)
    t5 = _convT_ref(t4, w2.reshape(2, 2, 2), b2[0])
    t8 = jnp.where(t5 <= 0.708, t5, t5 * NEGATIVE_SLOPE)
    return t8.reshape(N, 1, 4 * D, 4 * H, 4 * W)


if __name__ == "__main__":
    key = jax.random.PRNGKey(0)
    kx, kw1, kb1, kw2, kb2 = jax.random.split(key, 5)

    # Input: same shape as the PyTorch script, x = torch.randn(4, 1, 2, 2, 2)
    x = jax.random.normal(kx, (4, 1, 2, 2, 2), dtype=jnp.float32)

    # Deterministic parameter init (mirrors PyTorch's uniform(-1/sqrt(fan), 1/sqrt(fan)))
    bound = 1.0 / jnp.sqrt(8.0)
    w1 = jax.random.uniform(kw1, (1, 1, 2, 2, 2), jnp.float32, -bound, bound)
    b1 = jax.random.uniform(kb1, (1,), jnp.float32, -bound, bound)
    w2 = jax.random.uniform(kw2, (1, 1, 2, 2, 2), jnp.float32, -bound, bound)
    b2 = jax.random.uniform(kb2, (1,), jnp.float32, -bound, bound)

    out = jax.block_until_ready(model_forward_jit(x, w1, b1, w2, b2))

    ref = _model_ref(x, w1, b1, w2, b2)
    assert out.shape == (4, 1, 8, 8, 8), out.shape
    assert jnp.allclose(out, ref, atol=1e-5, rtol=1e-5), "mismatch vs reference"

    print("KERNEL_OK")
</pallas_src>

<mosaic_0001>
module attributes {stable_mosaic.version = 11 : i64} {
  func.func @kernel(%arg0: memref<4x8xf32, #tpu.memory_space<vmem>>, %arg1: memref<8xf32, #tpu.memory_space<smem>>, %arg2: memref<1xf32, #tpu.memory_space<smem>>, %arg3: memref<8xf32, #tpu.memory_space<smem>>, %arg4: memref<1xf32, #tpu.memory_space<smem>>, %arg5: memref<4x512xf32, #tpu.memory_space<vmem>>) attributes {dimension_semantics = [], scalar_prefetch = 0 : i64, scratch_operands = 0 : i64, tpu.core_type = #tpu.core_type<tc>} {
    %0 = tpu.iota {dimensions = array<i32: 1>} : vector<1x512xi32>
    %c6_i32 = arith.constant 6 : i32
    %1 = vector.broadcast %c6_i32 : i32 to vector<1x512xi32>
    %2 = arith.shrsi %0, %1 : vector<1x512xi32>
    %c64_i32 = arith.constant 64 : i32
    %3 = vector.broadcast %c64_i32 : i32 to vector<1x512xi32>
    %4 = arith.muli %2, %3 : vector<1x512xi32>
    %5 = arith.subi %0, %4 : vector<1x512xi32>
    %c3_i32 = arith.constant 3 : i32
    %6 = vector.broadcast %c3_i32 : i32 to vector<1x512xi32>
    %7 = arith.shrsi %5, %6 : vector<1x512xi32>
    %c8_i32 = arith.constant 8 : i32
    %8 = vector.broadcast %c8_i32 : i32 to vector<1x512xi32>
    %9 = arith.muli %7, %8 : vector<1x512xi32>
    %10 = arith.subi %5, %9 : vector<1x512xi32>
    %c1_i32 = arith.constant 1 : i32
    %11 = vector.broadcast %c1_i32 : i32 to vector<1x512xi32>
    %12 = arith.shrsi %2, %11 : vector<1x512xi32>
    %c1_i32_0 = arith.constant 1 : i32
    %13 = vector.broadcast %c1_i32_0 : i32 to vector<1x512xi32>
    %14 = arith.shrsi %7, %13 : vector<1x512xi32>
    %c1_i32_1 = arith.constant 1 : i32
    %15 = vector.broadcast %c1_i32_1 : i32 to vector<1x512xi32>
    %16 = arith.shrsi %10, %15 : vector<1x512xi32>
    %c1_i32_2 = arith.constant 1 : i32
    %17 = vector.broadcast %c1_i32_2 : i32 to vector<1x512xi32>
    %18 = arith.andi %2, %17 : vector<1x512xi32>
    %c1_i32_3 = arith.constant 1 : i32
    %19 = vector.broadcast %c1_i32_3 : i32 to vector<1x512xi32>
    %20 = arith.andi %7, %19 : vector<1x512xi32>
    %c1_i32_4 = arith.constant 1 : i32
    %21 = vector.broadcast %c1_i32_4 : i32 to vector<1x512xi32>
    %22 = arith.andi %10, %21 : vector<1x512xi32>
    %c1_i32_5 = arith.constant 1 : i32
    %23 = vector.broadcast %c1_i32_5 : i32 to vector<1x512xi32>
    %24 = arith.cmpi eq, %22, %23 : vector<1x512xi32>
    %c1 = arith.constant 1 : index
    %25 = memref.load %arg3[%c1] : memref<8xf32, #tpu.memory_space<smem>>
    %c0 = arith.constant 0 : index
    %26 = memref.load %arg3[%c0] : memref<8xf32, #tpu.memory_space<smem>>
    %27 = vector.broadcast %25 : f32 to vector<1x512xf32>
    %28 = vector.broadcast %26 : f32 to vector<1x512xf32>
    %29 = arith.select %24, %27, %28 : vector<1x512xi1>, vector<1x512xf32>
    %c3 = arith.constant 3 : index
    %30 = memref.load %arg3[%c3] : memref<8xf32, #tpu.memory_space<smem>>
    %c2 = arith.constant 2 : index
    %31 = memref.load %arg3[%c2] : memref<8xf32, #tpu.memory_space<smem>>
    %32 = vector.broadcast %30 : f32 to vector<1x512xf32>
    %33 = vector.broadcast %31 : f32 to vector<1x512xf32>
    %34 = arith.select %24, %32, %33 : vector<1x512xi1>, vector<1x512xf32>
    %c5 = arith.constant 5 : index
    %35 = memref.load %arg3[%c5] : memref<8xf32, #tpu.memory_space<smem>>
    %c4 = arith.constant 4 : index
    %36 = memref.load %arg3[%c4] : memref<8xf32, #tpu.memory_space<smem>>
    %37 = vector.broadcast %35 : f32 to vector<1x512xf32>
    %38 = vector.broadcast %36 : f32 to vector<1x512xf32>
    %39 = arith.select %24, %37, %38 : vector<1x512xi1>, vector<1x512xf32>
    %c7 = arith.constant 7 : index
    %40 = memref.load %arg3[%c7] : memref<8xf32, #tpu.memory_space<smem>>
    %c6 = arith.constant 6 : index
    %41 = memref.load %arg3[%c6] : memref<8xf32, #tpu.memory_space<smem>>
    %42 = vector.broadcast %40 : f32 to vector<1x512xf32>
    %43 = vector.broadcast %41 : f32 to vector<1x512xf32>
    %44 = arith.select %24, %42, %43 : vector<1x512xi1>, vector<1x512xf32>
    %c1_i32_6 = arith.constant 1 : i32
    %45 = vector.broadcast %c1_i32_6 : i32 to vector<1x512xi32>
    %46 = arith.cmpi eq, %20, %45 : vector<1x512xi32>
    %47 = arith.select %46, %34, %29 : vector<1x512xi1>, vector<1x512xf32>
    %48 = arith.select %46, %44, %39 : vector<1x512xi1>, vector<1x512xf32>
    %c1_i32_7 = arith.constant 1 : i32
    %49 = vector.broadcast %c1_i32_7 : i32 to vector<1x512xi32>
    %50 = arith.cmpi eq, %18, %49 : vector<1x512xi32>
    %51 = arith.select %50, %48, %47 : vector<1x512xi1>, vector<1x512xf32>
    %c1_i32_8 = arith.constant 1 : i32
    %52 = vector.broadcast %c1_i32_8 : i32 to vector<1x512xi32>
    %53 = arith.shrsi %12, %52 : vector<1x512xi32>
    %c1_i32_9 = arith.constant 1 : i32
    %54 = vector.broadcast %c1_i32_9 : i32 to vector<1x512xi32>
    %55 = arith.shrsi %14, %54 : vector<1x512xi32>
    %c1_i32_10 = arith.constant 1 : i32
    %56 = vector.broadcast %c1_i32_10 : i32 to vector<1x512xi32>
    %57 = arith.shrsi %16, %56 : vector<1x512xi32>
    %c1_i32_11 = arith.constant 1 : i32
    %58 = vector.broadcast %c1_i32_11 : i32 to vector<1x512xi32>
    %59 = arith.andi %12, %58 : vector<1x512xi32>
    %c1_i32_12 = arith.constant 1 : i32
    %60 = vector.broadcast %c1_i32_12 : i32 to vector<1x512xi32>
    %61 = arith.andi %14, %60 : vector<1x512xi32>
    %c1_i32_13 = arith.constant 1 : i32
    %62 = vector.broadcast %c1_i32_13 : i32 to vector<1x512xi32>
    %63 = arith.andi %16, %62 : vector<1x512xi32>
    %c1_i32_14 = arith.constant 1 : i32
    %64 = vector.broadcast %c1_i32_14 : i32 to vector<1x512xi32>
    %65 = arith.cmpi eq, %63, %64 : vector<1x512xi32>
    %c1_15 = arith.constant 1 : index
    %66 = memref.load %arg1[%c1_15] : memref<8xf32, #tpu.memory_space<smem>>
    %c0_16 = arith.constant 0 : index
    %67 = memref.load %arg1[%c0_16] : memref<8xf32, #tpu.memory_space<smem>>
    %68 = vector.broadcast %66 : f32 to vector<1x512xf32>
    %69 = vector.broadcast %67 : f32 to vector<1x512xf32>
    %70 = arith.select %65, %68, %69 : vector<1x512xi1>, vector<1x512xf32>
    %c3_17 = arith.constant 3 : index
    %71 = memref.load %arg1[%c3_17] : memref<8xf32, #tpu.memory_space<smem>>
    %c2_18 = arith.constant 2 : index
    %72 = memref.load %arg1[%c2_18] : memref<8xf32, #tpu.memory_space<smem>>
    %73 = vector.broadcast %71 : f32 to vector<1x512xf32>
    %74 = vector.broadcast %72 : f32 to vector<1x512xf32>
    %75 = arith.select %65, %73, %74 : vector<1x512xi1>, vector<1x512xf32>
    %c5_19 = arith.constant 5 : index
    %76 = memref.load %arg1[%c5_19] : memref<8xf32, #tpu.memory_space<smem>>
    %c4_20 = arith.constant 4 : index
    %77 = memref.load %arg1[%c4_20] : memref<8xf32, #tpu.memory_space<smem>>
    %78 = vector.broadcast %76 : f32 to vector<1x512xf32>
    %79 = vector.broadcast %77 : f32 to vector<1x512xf32>
    %80 = arith.select %65, %78, %79 : vector<1x512xi1>, vector<1x512xf32>
    %c7_21 = arith.constant 7 : index
    %81 = memref.load %arg1[%c7_21] : memref<8xf32, #tpu.memory_space<smem>>
    %c6_22 = arith.constant 6 : index
    %82 = memref.load %arg1[%c6_22] : memref<8xf32, #tpu.memory_space<smem>>
    %83 = vector.broadcast %81 : f32 to vector<1x512xf32>
    %84 = vector.broadcast %82 : f32 to vector<1x512xf32>
    %85 = arith.select %65, %83, %84 : vector<1x512xi1>, vector<1x512xf32>
    %c1_i32_23 = arith.constant 1 : i32
    %86 = vector.broadcast %c1_i32_23 : i32 to vector<1x512xi32>
    %87 = arith.cmpi eq, %61, %86 : vector<1x512xi32>
    %88 = arith.select %87, %75, %70 : vector<1x512xi1>, vector<1x512xf32>
    %89 = arith.select %87, %85, %80 : vector<1x512xi1>, vector<1x512xf32>
    %c1_i32_24 = arith.constant 1 : i32
    %90 = vector.broadcast %c1_i32_24 : i32 to vector<1x512xi32>
    %91 = arith.cmpi eq, %59, %90 : vector<1x512xi32>
    %92 = arith.select %91, %89, %88 : vector<1x512xi1>, vector<1x512xf32>
    %c2_i32 = arith.constant 2 : i32
    %93 = vector.broadcast %c2_i32 : i32 to vector<1x512xi32>
    %94 = arith.muli %53, %93 : vector<1x512xi32>
    %95 = arith.addi %94, %55 : vector<1x512xi32>
    %c2_i32_25 = arith.constant 2 : i32
    %96 = vector.broadcast %c2_i32_25 : i32 to vector<1x512xi32>
    %97 = arith.muli %95, %96 : vector<1x512xi32>
    %98 = arith.addi %97, %57 : vector<1x512xi32>
    %c0_26 = arith.constant 0 : index
    %c0_27 = arith.constant 0 : index
    %99 = vector.load %arg0[%c0_26, %c0_27] : memref<4x8xf32, #tpu.memory_space<vmem>>, vector<4x1xf32>
    %100 = vector.shape_cast %99 : vector<4x1xf32> to vector<4x1xf32>
    %101 = vector.broadcast %100 : vector<4x1xf32> to vector<4x512xf32>
    %c1_i32_28 = arith.constant 1 : i32
    %102 = vector.broadcast %c1_i32_28 : i32 to vector<1x512xi32>
    %103 = arith.cmpi eq, %98, %102 : vector<1x512xi32>
    %c0_29 = arith.constant 0 : index
    %c1_30 = arith.constant 1 : index
    %104 = vector.load %arg0[%c0_29, %c1_30] : memref<4x8xf32, #tpu.memory_space<vmem>>, vector<4x1xf32>
    %105 = vector.shape_cast %103 : vector<1x512xi1> to vector<1x512xi1>
    %106 = vector.broadcast %105 : vector<1x512xi1> to vector<4x512xi1>
    %107 = vector.shape_cast %104 : vector<4x1xf32> to vector<4x1xf32>
    %108 = vector.broadcast %107 : vector<4x1xf32> to vector<4x512xf32>
    %109 = arith.select %106, %108, %101 : vector<4x512xi1>, vector<4x512xf32>
    %c2_i32_31 = arith.constant 2 : i32
    %110 = vector.broadcast %c2_i32_31 : i32 to vector<1x512xi32>
    %111 = arith.cmpi eq, %98, %110 : vector<1x512xi32>
    %c0_32 = arith.constant 0 : index
    %c2_33 = arith.constant 2 : index
    %112 = vector.load %arg0[%c0_32, %c2_33] : memref<4x8xf32, #tpu.memory_space<vmem>>, vector<4x1xf32>
    %113 = vector.shape_cast %111 : vector<1x512xi1> to vector<1x512xi1>
    %114 = vector.broadcast %113 : vector<1x512xi1> to vector<4x512xi1>
    %115 = vector.shape_cast %112 : vector<4x1xf32> to vector<4x1xf32>
    %116 = vector.broadcast %115 : vector<4x1xf32> to vector<4x512xf32>
    %117 = arith.select %114, %116, %109 : vector<4x512xi1>, vector<4x512xf32>
    %c3_i32_34 = arith.constant 3 : i32
    %118 = vector.broadcast %c3_i32_34 : i32 to vector<1x512xi32>
    %119 = arith.cmpi eq, %98, %118 : vector<1x512xi32>
    %c0_35 = arith.constant 0 : index
    %c3_36 = arith.constant 3 : index
    %120 = vector.load %arg0[%c0_35, %c3_36] : memref<4x8xf32, #tpu.memory_space<vmem>>, vector<4x1xf32>
    %121 = vector.shape_cast %119 : vector<1x512xi1> to vector<1x512xi1>
    %122 = vector.broadcast %121 : vector<1x512xi1> to vector<4x512xi1>
    %123 = vector.shape_cast %120 : vector<4x1xf32> to vector<4x1xf32>
    %124 = vector.broadcast %123 : vector<4x1xf32> to vector<4x512xf32>
    %125 = arith.select %122, %124, %117 : vector<4x512xi1>, vector<4x512xf32>
    %c4_i32 = arith.constant 4 : i32
    %126 = vector.broadcast %c4_i32 : i32 to vector<1x512xi32>
    %127 = arith.cmpi eq, %98, %126 : vector<1x512xi32>
    %c0_37 = arith.constant 0 : index
    %c4_38 = arith.constant 4 : index
    %128 = vector.load %arg0[%c0_37, %c4_38] : memref<4x8xf32, #tpu.memory_space<vmem>>, vector<4x1xf32>
    %129 = vector.shape_cast %127 : vector<1x512xi1> to vector<1x512xi1>
    %130 = vector.broadcast %129 : vector<1x512xi1> to vector<4x512xi1>
    %131 = vector.shape_cast %128 : vector<4x1xf32> to vector<4x1xf32>
    %132 = vector.broadcast %131 : vector<4x1xf32> to vector<4x512xf32>
    %133 = arith.select %130, %132, %125 : vector<4x512xi1>, vector<4x512xf32>
    %c5_i32 = arith.constant 5 : i32
    %134 = vector.broadcast %c5_i32 : i32 to vector<1x512xi32>
    %135 = arith.cmpi eq, %98, %134 : vector<1x512xi32>
    %c0_39 = arith.constant 0 : index
    %c5_40 = arith.constant 5 : index
    %136 = vector.load %arg0[%c0_39, %c5_40] : memref<4x8xf32, #tpu.memory_space<vmem>>, vector<4x1xf32>
    %137 = vector.shape_cast %135 : vector<1x512xi1> to vector<1x512xi1>
    %138 = vector.broadcast %137 : vector<1x512xi1> to vector<4x512xi1>
    %139 = vector.shape_cast %136 : vector<4x1xf32> to vector<4x1xf32>
    %140 = vector.broadcast %139 : vector<4x1xf32> to vector<4x512xf32>
    %141 = arith.select %138, %140, %133 : vector<4x512xi1>, vector<4x512xf32>
    %c6_i32_41 = arith.constant 6 : i32
    %142 = vector.broadcast %c6_i32_41 : i32 to vector<1x512xi32>
    %143 = arith.cmpi eq, %98, %142 : vector<1x512xi32>
    %c0_42 = arith.constant 0 : index
    %c6_43 = arith.constant 6 : index
    %144 = vector.load %arg0[%c0_42, %c6_43] : memref<4x8xf32, #tpu.memory_space<vmem>>, vector<4x1xf32>
    %145 = vector.shape_cast %143 : vector<1x512xi1> to vector<1x512xi1>
    %146 = vector.broadcast %145 : vector<1x512xi1> to vector<4x512xi1>
    %147 = vector.shape_cast %144 : vector<4x1xf32> to vector<4x1xf32>
    %148 = vector.broadcast %147 : vector<4x1xf32> to vector<4x512xf32>
    %149 = arith.select %146, %148, %141 : vector<4x512xi1>, vector<4x512xf32>
    %c7_i32 = arith.constant 7 : i32
    %150 = vector.broadcast %c7_i32 : i32 to vector<1x512xi32>
    %151 = arith.cmpi eq, %98, %150 : vector<1x512xi32>
    %c0_44 = arith.constant 0 : index
    %c7_45 = arith.constant 7 : index
    %152 = vector.load %arg0[%c0_44, %c7_45] : memref<4x8xf32, #tpu.memory_space<vmem>>, vector<4x1xf32>
    %153 = vector.shape_cast %151 : vector<1x512xi1> to vector<1x512xi1>
    %154 = vector.broadcast %153 : vector<1x512xi1> to vector<4x512xi1>
    %155 = vector.shape_cast %152 : vector<4x1xf32> to vector<4x1xf32>
    %156 = vector.broadcast %155 : vector<4x1xf32> to vector<4x512xf32>
    %157 = arith.select %154, %156, %149 : vector<4x512xi1>, vector<4x512xf32>
    %158 = vector.broadcast %92 : vector<1x512xf32> to vector<4x512xf32>
    %159 = arith.mulf %157, %158 : vector<4x512xf32>
    %c0_46 = arith.constant 0 : index
    %160 = memref.load %arg2[%c0_46] : memref<1xf32, #tpu.memory_space<smem>>
    %161 = vector.broadcast %160 : f32 to vector<4x512xf32>
    %162 = arith.addf %159, %161 : vector<4x512xf32>
    %cst = arith.constant 0.899999976 : f32
    %163 = vector.broadcast %cst : f32 to vector<4x512xf32>
    %164 = arith.cmpf ole, %162, %163 : vector<4x512xf32>
    %cst_47 = arith.constant 1.300000e-01 : f32
    %165 = vector.broadcast %cst_47 : f32 to vector<4x512xf32>
    %166 = arith.mulf %162, %165 : vector<4x512xf32>
    %167 = arith.select %164, %162, %166 : vector<4x512xi1>, vector<4x512xf32>
    %168 = vector.broadcast %51 : vector<1x512xf32> to vector<4x512xf32>
    %169 = arith.mulf %167, %168 : vector<4x512xf32>
    %c0_48 = arith.constant 0 : index
    %170 = memref.load %arg4[%c0_48] : memref<1xf32, #tpu.memory_space<smem>>
    %171 = vector.broadcast %170 : f32 to vector<4x512xf32>
    %172 = arith.addf %169, %171 : vector<4x512xf32>
    %cst_49 = arith.constant 7.080000e-01 : f32
    %173 = vector.broadcast %cst_49 : f32 to vector<4x512xf32>
    %174 = arith.cmpf ole, %172, %173 : vector<4x512xf32>
    %cst_50 = arith.constant 1.300000e-01 : f32
    %175 = vector.broadcast %cst_50 : f32 to vector<4x512xf32>
    %176 = arith.mulf %172, %175 : vector<4x512xf32>
    %177 = arith.select %174, %172, %176 : vector<4x512xi1>, vector<4x512xf32>
    %c0_51 = arith.constant 0 : index
    %c0_52 = arith.constant 0 : index
    %178 = vector.load %arg5[%c0_51, %c0_52] : memref<4x512xf32, #tpu.memory_space<vmem>>, vector<4x512xf32>
    tpu.vector_store %arg5[%c0_51, %c0_52], %177 {strides = array<i32>} : memref<4x512xf32, #tpu.memory_space<vmem>>, vector<4x512xf32>,
    return
  }
}

</mosaic_0001>

<bundles_post_ra>
// kernel: model_forward.1
= control target key start
LH: loop header
LB: loop body
LE: loop exit
PB: predicated region body
PF: predicated region fallthrough
CT: control target
= control target key end

     0   :  { %12 = vsyncpa [#allocation5], 0  ;;  %s1132_s0 = inlined_call_operand.vmem [shape: f32[4,8], index: 0, kind: input, shape index: {}]   ;;  %s1133_s1 = inlined_call_operand.vmem [shape: f32[8], index: 1, kind: input, shape index: {}]   ;;  %s1134_s2 = inlined_call_operand.<no memory space> [shape: f32[1], index: 2, kind: input, shape index: {}]   ;;  %s1135_s3 = inlined_call_operand.vmem [shape: f32[8], index: 3, kind: input, shape index: {}]   ;;  %s1136_s4 = inlined_call_operand.<no memory space> [shape: f32[1], index: 4, kind: input, shape index: {}]   ;;  %s1137_s5 = inlined_call_operand.vmem [shape: f32[4,512], index: 5, kind: output, shape index: {}]  }
   0x1   :  { %s22_s20 = sshll.u32 %s1133_s1, 4  ;;  %s23_s20 = int_to_ptr.vmem [resolvable:$true] %s22_s20 }
   0x2   :  { %13 = vsyncpa [#allocation7], 0  ;;  %s34_s23 = sshll.u32 %s1135_s3, 4  ;;  %s491_s24 = scalar_lea.vmem %s23_s20, 16  ;;  %s35_s23 = int_to_ptr.vmem [resolvable:$true] %s34_s23 }
   0x3   :  { %p492_p0 = scmp.ne.s32.totalorder %s23_s20, %s491_s24  ;;  %p496_p1 = scmp.lt.s32.totalorder %s23_s20, %s23_s20 }
   0x4   :  { %p497_p2 = scmp.lt.s32.totalorder %s491_s24, %s491_s24 }
   0x6   :  { %p498_p3 = por %p497_p2, %p496_p1 }
   0x8   :  { %p499_p4 = pnand %p498_p3, %p492_p0 }
   0xa   :  { %502 = shalt.err (!%p499_p4)
}
   0xb   :  { %s519_s25 = smov [#allocation4]   ;;  %s503_s26 = scalar_lea.vmem %s35_s23, 16 }
   0xc   :  { %25 = dma.vmem_to_smem %s23_s20, 16, %s519_s25, [#allocation5]  }
   0xd   :  { %p504_p5 = scmp.ne.s32.totalorder %s35_s23, %s503_s26  ;;  %p508_p6 = scmp.lt.s32.totalorder %s35_s23, %s35_s23 }
   0xe   :  { %p509_p7 = scmp.lt.s32.totalorder %s503_s26, %s503_s26 }
  0x10   :  { %p510_p8 = por %p509_p7, %p508_p6 }
  0x12   :  { %p511_p9 = pnand %p510_p8, %p504_p5 }
  0x14   :  { %514 = shalt.err (!%p511_p9)
}
  0x15   :  { %s520_s1 = smov [#allocation6]  }
  0x16   :  { %37 = dma.vmem_to_smem %s35_s23, 16, %s520_s1, [#allocation7]  }
  0x17   :  { %515 = dma.done.wait [#allocation5], 16  }
  0x18   :  { %516 = vsyncadd [#allocation5], 4294967280 }
  0x19   :  { %517 = dma.done.wait [#allocation7], 16  }
  0x1a   :  { %518 = vsyncadd [#allocation7], 4294967280 }
  0x1b   :  { %46 = sfence }
  0x1c   :  { %v252_v0 = vld [vmem:[%s1132_s0] sm:$0xf]  ;;  %v521_v1 = vmov 2   ;;  %v522_v2 = vmov 0   ;;  %v523_v3 = vmov 3   ;;  %v524_v4 = vmov 1  }
  0x1d   :  { %484 = vset.pattern.permute.xlu1 %v521_v1  ;;  %482 = vset.pattern.permute.xlu0 %v522_v2  ;;  %v525_v5 = vmov 4   ;;  %v526_v6 = vmov 5   ;;  %v527_v7 = vmov 6   ;;  %v528_v8 = vmov 7   ;;  %s458_s0 = sld [smem:[#allocation6 + $0x1]]  ;;  %s105_s28 = sld [smem:[#allocation6]] }
  0x1e   :  { %291 = vperm.xlu1 %484, %v252_v0   ;;  %255 = vperm.xlu0 %482, %v252_v0   ;;  %v47_v9 = vlaneseq  ;;  %s628_s29 = sld [smem:[#allocation6 + $0x3]]  ;;  %s630_s30 = sld [smem:[#allocation6 + $0x2]] }
  0x1f   :  { %s638_s6 = sld [smem:[#allocation6 + $0x5]]  ;;  %s644_s7 = sld [smem:[#allocation6 + $0x4]] }
  0x20   :  { %v48_v10 = vand.u32 127, %v47_v9  ;;  %s651_s10 = sld [smem:[#allocation6 + $0x7]]  ;;  %s653_s11 = sld [smem:[#allocation6 + $0x6]] }
  0x21   :  { %s695_s12 = sld [smem:[#allocation4]]  ;;  %s717_s13 = sld [smem:[#allocation4 + $0x3]] }
  0x22   :  { %485 = vset.pattern.permute.xlu1 %v523_v3  ;;  %483 = vset.pattern.permute.xlu0 %v524_v4  ;;  %v49_v11 = vadd.s32 128, %v48_v10  ;;  %v50_v12 = vadd.s32 256, %v48_v10  ;;  %v51_v13 = vadd.s32 384, %v48_v10  ;;  %v568_v14 = vshra.s32 %v48_v10, 6  ;;  %s719_s14 = sld [smem:[#allocation4 + $0x2]]  ;;  %s749_s15 = sld [smem:[#allocation4 + $0x5]] }
  0x23   :  { %311 = vperm.xlu1 %485, %v252_v0   ;;  %271 = vperm.xlu0 %483, %v252_v0   ;;  %s765_s16 = sld [smem:[#allocation4 + $0x4]]  ;;  %s783_s17 = sld [smem:[#allocation4 + $0x7]] }
  0x24   :  { %v570_v15 = vshra.s32 %v49_v11, 6  ;;  %v572_v16 = vshra.s32 %v50_v12, 6  ;;  %v574_v17 = vshra.s32 %v51_v13, 6  ;;  %v56_v18 = vmul.u32 64, %v568_v14  ;;  %s785_s18 = sld [smem:[#allocation4 + $0x6]] }
  0x25   :  { %v76_v25 = vshra.s32 %v568_v14, 1 }
  0x26   :  { %v57_v19 = vmul.u32 64, %v570_v15  ;;  %v58_v20 = vmul.u32 64, %v572_v16  ;;  %v60_v22 = vsub.s32 %v48_v10, %v56_v18  ;;  %v77_v27 = vshra.s32 %v570_v15, 1 }
  0x27   :  { %486 = vset.pattern.permute.xlu1 %v525_v5  ;;  %487 = vset.pattern.permute.xlu0 %v526_v6  ;;  %v59_v21 = vmul.u32 64, %v574_v17  ;;  %v78_v31 = vshra.s32 %v572_v16, 1  ;;  %v156_v32 = vshra.s32 %v76_v25, 1  ;;  %v79_v34 = vshra.s32 %v574_v17, 1 }
  0x28   :  { %331 = vperm.xlu1 %486, %v252_v0   ;;  %351 = vperm.xlu0 %487, %v252_v0   ;;  %v61_v23 = vsub.s32 %v49_v11, %v57_v19  ;;  %v62_v24 = vsub.s32 %v50_v12, %v58_v20  ;;  %v582_v28 = vshra.s32 %v60_v22, 3  ;;  %v157_v35 = vshra.s32 %v77_v27, 1 }
  0x29   :  { %v63_v26 = vsub.s32 %v51_v13, %v59_v21  ;;  %v158_v42 = vshra.s32 %v78_v31, 1  ;;  %v236_v43 = vmul.u32 2, %v156_v32  ;;  %v159_v46 = vshra.s32 %v79_v34, 1 }
  0x2a   :  { %v584_v29 = vshra.s32 %v61_v23, 3  ;;  %v586_v30 = vshra.s32 %v62_v24, 3  ;;  %v68_v36 = vmul.u32 8, %v582_v28  ;;  %v80_v38 = vshra.s32 %v582_v28, 1 }
  0x2b   :  { %v591_v33 = vshra.s32 %v63_v26, 3  ;;  %v237_v47 = vmul.u32 2, %v157_v35  ;;  %v238_v54 = vmul.u32 2, %v158_v42  ;;  %v649_v18 = vstv %s1134_s2  ;;  %s693_s2 = sld [smem:[#allocation4 + $0x1]] }
  0x2c   :  { %488 = vset.pattern.permute.xlu1 %v527_v7  ;;  %490 = vset.pattern.permute.xlu0 %v528_v8  ;;  %v69_v37 = vmul.u32 8, %v584_v29  ;;  %v81_v39 = vshra.s32 %v584_v29, 1  ;;  %v70_v40 = vmul.u32 8, %v586_v30  ;;  %v82_v41 = vshra.s32 %v586_v30, 1 }
  0x2d   :  { %371 = vperm.xlu1 %488, %v252_v0   ;;  %v71_v44 = vmul.u32 8, %v591_v33  ;;  %v83_v45 = vshra.s32 %v591_v33, 1  ;;  %v608_v48 = vsub.s32 %v60_v22, %v68_v36  ;;  %v160_v50 = vshra.s32 %v80_v38, 1 }
  0x2e   :  { %v610_v49 = vsub.s32 %v61_v23, %v69_v37  ;;  %v161_v51 = vshra.s32 %v81_v39, 1  ;;  %v616_v52 = vsub.s32 %v62_v24, %v70_v40  ;;  %v162_v53 = vshra.s32 %v82_v41, 1 }
  0x2f   :  { %v620_v55 = vsub.s32 %v63_v26, %v71_v44  ;;  %v163_v56 = vshra.s32 %v83_v45, 1  ;;  %v239_v57 = vmul.u32 2, %v159_v46  ;;  %v84_v58 = vshra.s32 %v608_v48, 1 }
  0x30   :  { %v85_v59 = vshra.s32 %v610_v49, 1  ;;  %v240_v60 = vadd.s32 %v236_v43, %v160_v50  ;;  %v241_v61 = vadd.s32 %v237_v47, %v161_v51  ;;  %v86_v62 = vshra.s32 %v616_v52, 1 }
  0x31   :  { %489 = vset.pattern.permute.xlu1 %v528_v8  ;;  %v242_v63 = vadd.s32 %v238_v54, %v162_v53  ;;  %v243_v1 = vadd.s32 %v239_v57, %v163_v56  ;;  %v164_v2 = vshra.s32 %v84_v58, 1  ;;  %v96_v8 = vand.u32 1, %v608_v48 }
  0x32   :  { %391 = vperm.xlu1 %489, %v252_v0   ;;  %v87_v0 = vshra.s32 %v620_v55, 1  ;;  %v165_v3 = vshra.s32 %v85_v59, 1  ;;  %v244_v4 = vmul.u32 2, %v240_v60  ;;  %v245_v5 = vmul.u32 2, %v241_v61 }
  0x33   :  { %v166_v6 = vshra.s32 %v86_v62, 1  ;;  %v246_v7 = vmul.u32 2, %v242_v63  ;;  %v97_v9 = vand.u32 1, %v610_v49  ;;  %v98_v10 = vand.u32 1, %v616_v52 }
  0x34   :  { %v99_v11 = vand.u32 1, %v620_v55  ;;  %v167_v12 = vshra.s32 %v87_v0, 1  ;;  %v247_v13 = vmul.u32 2, %v243_v1  ;;  %v655_v19 = vadd.s32 %v244_v4, %v164_v2 }
  0x35   :  { %v657_v20 = vadd.s32 %v245_v5, %v165_v3  ;;  %v661_v23 = vadd.s32 %v246_v7, %v166_v6  ;;  %v664_v26 = vstv %s458_s0  ;;  %v666_v32 = vstv %s105_s28 }
  0x36   :  { %vm668_vm0 = vcmp.eq.s32.totalorder %v96_v8, 1  ;;  %vm672_vm1 = vcmp.eq.s32.totalorder %v97_v9, 1  ;;  %vm676_vm2 = vcmp.eq.s32.totalorder %v98_v10, 1  ;;  %v1153_v37 = vmov 0 }
  0x37   :  { %v1154_v37 = vsel %vm676_vm2, 4294967295, %v1153_v37  ;;  %vm680_vm3 = vcmp.eq.s32.totalorder %v99_v11, 1  ;;  %v1155_v40 = vmov 0  ;;  %v684_v42 = vadd.s32 %v247_v13, %v167_v12 }
  0x38   :  { %v1156_v40 = vsel %vm680_vm3, 4294967295, %v1155_v40  ;;  %v688_v44 = vstv %s628_s29  ;;  %v691_v46 = vstv %s630_s30  ;;  %v92_v47 = vand.u32 1, %v582_v28 }
  0x39   :  { %v93_v50 = vand.u32 1, %v584_v29  ;;  %v94_v51 = vand.u32 1, %v586_v30  ;;  %v95_v53 = vand.u32 1, %v591_v33  ;;  %v108_v54 = vsel %vm668_vm0, %v664_v26, %v666_v32 }
  0x3a   :  { %v109_v55 = vsel %vm672_vm1, %v664_v26, %v666_v32  ;;  %v116_v60 = vsel %vm668_vm0, %v688_v44, %v691_v46  ;;  %v730_v63 = vstv %s638_s6  ;;  %v733_v1 = vstv %s644_s7 }
  0x3b   :  { %v744_v4 = vstv %s651_s10  ;;  %v747_v5 = vstv %s653_s11  ;;  %v753_v6 = vand.u32 1, %v84_v58  ;;  %v757_v7 = vand.u32 1, %v85_v59 }
  0x3c   :  { %v761_v8 = vand.u32 1, %v86_v62  ;;  %v763_v9 = vand.u32 1, %v87_v0  ;;  %v809_v11 = vand.u32 1, %v76_v25  ;;  %v813_v12 = vand.u32 1, %v77_v27 }
  0x3d   :  { %v186_v13 = vstv %s693_s2  ;;  %v187_v43 = vstv %s695_s12  ;;  %vm1139_vm8 = vcmp.eq.s32.totalorder %v753_v6, 1  ;;  %vm1138_vm9 = vcmp.eq.s32.totalorder %v757_v7, 1 }
  0x3e   :  { %vm1143_vm10 = vcmp.eq.s32.totalorder %v761_v8, 1  ;;  %vm1144_vm11 = vcmp.eq.s32.totalorder %v763_v9, 1  ;;  %v827_v25 = vand.u32 1, %v78_v31  ;;  %v831_v27 = vand.u32 1, %v79_v34 }
  0x3f   :  { %v194_v52 = vstv %s717_s13  ;;  %v195_v62 = vstv %s719_s14  ;;  %v172_v31 = vand.u32 1, %v80_v38  ;;  %v173_v49 = vand.u32 1, %v81_v39 }
  0x40   :  { %v174_v34 = vand.u32 1, %v82_v41  ;;  %v175_v22 = vand.u32 1, %v83_v45  ;;  %vm847_vm12 = vcmp.eq.s32.totalorder %v92_v47, 1  ;;  %vm851_vm14 = vcmp.eq.s32.totalorder %v93_v50, 1 }
  0x41   :  { %vm855_vm15 = vcmp.eq.s32.totalorder %v94_v51, 1  ;;  %v1161_v28 = vmov 0  ;;  %vm859_vm13 = vcmp.eq.s32.totalorder %v95_v53, 1  ;;  %v1163_v29 = vmov 0 }
  0x42   :  { %v1162_v28 = vsel %vm855_vm15, 4294967295, %v1161_v28  ;;  %v1164_v29 = vsel %vm859_vm13, 4294967295, %v1163_v29  ;;  %v188_v30 = vsel %vm1139_vm8, %v186_v13, %v187_v43  ;;  %v189_v33 = vsel %vm1138_vm9, %v186_v13, %v187_v43 }
  0x43   :  { %v190_v38 = vsel %vm1143_vm10, %v186_v13, %v187_v43  ;;  %v191_v39 = vsel %vm1144_vm11, %v186_v13, %v187_v43  ;;  %v196_v41 = vsel %vm1139_vm8, %v194_v52, %v195_v62  ;;  %v197_v45 = vsel %vm1138_vm9, %v194_v52, %v195_v62 }
  0x44   :  { %v202_v47 = vstv %s749_s15  ;;  %v203_v50 = vstv %s765_s16  ;;  %v198_v51 = vsel %vm1143_vm10, %v194_v52, %v195_v62  ;;  %v199_v43 = vsel %vm1144_vm11, %v194_v52, %v195_v62 }
  0x45   :  { %v210_v53 = vstv %s783_s17  ;;  %v211_v13 = vstv %s785_s18  ;;  %vm216_vm5 = vcmp.eq.s32.totalorder %v172_v31, 1  ;;  %vm217_vm13 = vcmp.eq.s32.totalorder %v173_v49, 1 }
  0x46   :  { %vm218_vm4 = vcmp.eq.s32.totalorder %v174_v34, 1  ;;  %vm1165_vm10 = vcmp.eq.s32.totalorder %v753_v6, 1  ;;  %vm1166_vm11 = vcmp.eq.s32.totalorder %v757_v7, 1  ;;  %vm1167_vm15 = vcmp.eq.s32.totalorder %v761_v8, 1 }
  0x47   :  { %v204_v10 = vsel %vm1165_vm10, %v202_v47, %v203_v50  ;;  %v205_v52 = vsel %vm1166_vm11, %v202_v47, %v203_v50  ;;  %v206_v62 = vsel %vm1167_vm15, %v202_v47, %v203_v50  ;;  %vm1168_vm8 = vcmp.eq.s32.totalorder %v763_v9, 1  ;;  %vm1169_vm7 = vmmov %vm1165_vm10 }
  0x48   :  { %v207_v3 = vsel %vm1168_vm8, %v202_v47, %v203_v50  ;;  %v212_v57 = vsel %vm1169_vm7, %v210_v53, %v211_v13  ;;  %vm1170_vm6 = vmmov %vm1166_vm11  ;;  %v220_v6 = vsel %vm216_vm5, %v196_v41, %v188_v30  ;;  %v221_v47 = vsel %vm217_vm13, %v197_v45, %v189_v33 }
  0x49   :  { %v213_v2 = vsel %vm1170_vm6, %v210_v53, %v211_v13  ;;  %vm1171_vm9 = vmmov %vm1167_vm15  ;;  %v222_v7 = vsel %vm218_vm4, %v198_v51, %v190_v38  ;;  %vm1173_vm6 = vcmp.eq.s32.totalorder %v175_v22, 1  ;;  %vm1174_vm7 = vcmp.eq.s32.totalorder %v655_v19, 1 }
  0x4a   :  { %v214_v56 = vsel %vm1171_vm9, %v210_v53, %v211_v13  ;;  %vm1172_vm10 = vmmov %vm1168_vm8  ;;  %v223_v8 = vsel %vm1173_vm6, %v199_v43, %v191_v39  ;;  %vm1175_vm9 = vcmp.eq.s32.totalorder %v657_v20, 1  ;;  %vm1177_vm8 = vcmp.eq.s32.totalorder %v684_v42, 1 }
  0x4b   :  { %v215_v61 = vsel %vm1172_vm10, %v210_v53, %v211_v13  ;;  %vm1176_vm10 = vcmp.eq.s32.totalorder %v661_v23, 1  ;;  %v224_v38 = vsel %vm216_vm5, %v212_v57, %v204_v10  ;;  %v225_v39 = vsel %vm217_vm13, %v213_v2, %v205_v52 }
  0x4c   :  { %v226_v41 = vsel %vm218_vm4, %v214_v56, %v206_v62  ;;  %v227_v45 = vsel %vm1173_vm6, %v215_v61, %v207_v3  ;;  %vm230_vm15 = vcmp.eq.s32.totalorder %v827_v25, 1  ;;  %vm1179_vm5 = vcmp.eq.s32.totalorder %v657_v20, 2 }
  0x4d   :  { %vm1180_vm4 = vcmp.eq.s32.totalorder %v661_v23, 2  ;;  %vm1181_vm13 = vcmp.eq.s32.totalorder %v684_v42, 2  ;;  %v959_v61 = vsel %vm847_vm12, %v116_v60, %v108_v54  ;;  %v1183_v54 = vsel %vm676_vm2, %v664_v26, %v666_v32 }
  0x4e   :  { %v1184_v60 = vsel %vm676_vm2, %v688_v44, %v691_v46  ;;  %vm1185_vm6 = vnez %v1162_v28  ;;  %vm1193_vm11 = vcmp.eq.s32.totalorder %v684_v42, 3  ;;  %vm1201_vm2 = vcmp.eq.s32.totalorder %v684_v42, 5 }
  0x4f   :  { %v987_v3 = vsel %vm1185_vm6, %v1184_v60, %v1183_v54  ;;  %vm1200_vm6 = vcmp.eq.s32.totalorder %v661_v23, 5  ;;  %v1206_v35 = vand.u32 1, %v568_v14  ;;  %v1209_v21 = vand.u32 1, %v570_v15 }
  0x9d   :  { %v821_v24 = vpop.permute.xlu1 %291  ;;  %v823_v0 = vpop.permute.xlu0 %255 }
  0xa2   :  { %v312_v48 = vpop.permute.xlu1 %311  ;;  %v272_v58 = vpop.permute.xlu0 %271 }
  0xa3   :  { %v274_v9 = vsel %vm1174_vm7, %v272_v58, %v823_v0  ;;  %v275_v50 = vsel %vm1175_vm9, %v272_v58, %v823_v0  ;;  %v276_v53 = vsel %vm1176_vm10, %v272_v58, %v823_v0  ;;  %v277_v30 = vsel %vm1177_vm8, %v272_v58, %v823_v0 }
  0xa4   :  { %vm228_vm7 = vcmp.eq.s32.totalorder %v809_v11, 1  ;;  %vm229_vm9 = vcmp.eq.s32.totalorder %v813_v12, 1  ;;  %vm231_vm10 = vcmp.eq.s32.totalorder %v831_v27, 1  ;;  %vm1178_vm8 = vcmp.eq.s32.totalorder %v655_v19, 2 }
  0xa5   :  { %v294_v58 = vsel %vm1178_vm8, %v821_v24, %v274_v9  ;;  %v295_v57 = vsel %vm1179_vm5, %v821_v24, %v275_v50  ;;  %v296_v22 = vsel %vm1180_vm4, %v821_v24, %v276_v53  ;;  %v297_v56 = vsel %vm1181_vm13, %v821_v24, %v277_v30  ;;  %vm1186_vm8 = vmmov %vm680_vm3 }
  0xa6   :  { %v1182_v24 = vsel %vm672_vm1, %v688_v44, %v691_v46  ;;  %v1188_v10 = vsel %vm1186_vm8, %v688_v44, %v691_v46  ;;  %vm1189_vm5 = vnez %v1164_v29  ;;  %v232_v0 = vsel %vm228_vm7, %v224_v38, %v220_v6 }
  0xa7   :  { %v332_v33 = vpop.permute.xlu1 %331  ;;  %v973_v2 = vsel %vm851_vm14, %v1182_v24, %v109_v55  ;;  %v1187_v55 = vsel %vm1186_vm8, %v664_v26, %v666_v32  ;;  %v233_v11 = vsel %vm229_vm9, %v225_v39, %v221_v47  ;;  %v234_v12 = vsel %vm230_vm15, %v226_v41, %v222_v7  ;;  %v352_v46 = vpop.permute.xlu0 %351 }
  0xa8   :  { %v1001_v49 = vsel %vm1189_vm5, %v1188_v10, %v1187_v55  ;;  %v235_v25 = vsel %vm231_vm10, %v227_v45, %v223_v8  ;;  %vm1190_vm4 = vcmp.eq.s32.totalorder %v655_v19, 3  ;;  %vm1191_vm13 = vcmp.eq.s32.totalorder %v657_v20, 3 }
  0xa9   :  { %v314_v27 = vsel %vm1190_vm4, %v312_v48, %v294_v58  ;;  %v315_v31 = vsel %vm1191_vm13, %v312_v48, %v295_v57  ;;  %vm1192_vm3 = vcmp.eq.s32.totalorder %v661_v23, 3  ;;  %v317_v32 = vsel %vm1193_vm11, %v312_v48, %v297_v56 }
  0xaa   :  { %v316_v26 = vsel %vm1192_vm3, %v312_v48, %v296_v22  ;;  %vm1194_vm5 = vcmp.eq.s32.totalorder %v655_v19, 4  ;;  %vm1195_vm15 = vcmp.eq.s32.totalorder %v657_v20, 4  ;;  %vm1196_vm7 = vcmp.eq.s32.totalorder %v661_v23, 4 }
  0xab   :  { %v334_v34 = vsel %vm1194_vm5, %v332_v33, %v314_v27  ;;  %v335_v51 = vsel %vm1195_vm15, %v332_v33, %v315_v31  ;;  %v336_v43 = vsel %vm1196_vm7, %v332_v33, %v316_v26  ;;  %vm1197_vm9 = vcmp.eq.s32.totalorder %v684_v42, 4 }
  0xac   :  { %v372_v44 = vpop.permute.xlu1 %371  ;;  %v337_v13 = vsel %vm1197_vm9, %v332_v33, %v317_v32  ;;  %vm358_vm10 = vcmp.eq.s32.totalorder %v655_v19, 6  ;;  %vm359_vm3 = vcmp.eq.s32.totalorder %v657_v20, 6  ;;  %vm360_vm11 = vcmp.eq.s32.totalorder %v661_v23, 6 }
  0xad   :  { %vm361_vm4 = vcmp.eq.s32.totalorder %v684_v42, 6  ;;  %vm378_vm13 = vcmp.eq.s32.totalorder %v655_v19, 7  ;;  %vm379_vm5 = vcmp.eq.s32.totalorder %v657_v20, 7  ;;  %vm380_vm15 = vcmp.eq.s32.totalorder %v661_v23, 7 }
  0xae   :  { %vm381_vm8 = vcmp.eq.s32.totalorder %v684_v42, 7  ;;  %vm1198_vm7 = vcmp.eq.s32.totalorder %v655_v19, 5  ;;  %vm1199_vm9 = vcmp.eq.s32.totalorder %v657_v20, 5  ;;  %v356_v62 = vsel %vm1200_vm6, %v352_v46, %v336_v43 }
  0xaf   :  { %v354_v48 = vsel %vm1198_vm7, %v352_v46, %v334_v34  ;;  %v355_v52 = vsel %vm1199_vm9, %v352_v46, %v335_v51  ;;  %v357_v6 = vsel %vm1201_vm2, %v352_v46, %v337_v13  ;;  %v376_v9 = vsel %vm360_vm11, %v372_v44, %v356_v62 }
  0xb0   :  { %v374_v7 = vsel %vm358_vm10, %v372_v44, %v354_v48  ;;  %v375_v8 = vsel %vm359_vm3, %v372_v44, %v355_v52  ;;  %v377_v50 = vsel %vm361_vm4, %v372_v44, %v357_v6  ;;  %v1202_v23 = vsel %vm668_vm0, %v730_v63, %v733_v1 }
  0xb1   :  { %v392_v47 = vpop.permute.xlu1 %391  ;;  %v1203_v42 = vsel %vm668_vm0, %v744_v4, %v747_v5  ;;  %v1204_v58 = vsel %vm672_vm1, %v730_v63, %v733_v1  ;;  %v1205_v57 = vsel %vm672_vm1, %v744_v4, %v747_v5  ;;  %vm1061_vm2 = vcmp.eq.s32.totalorder %v1206_v35, 1 }
  0xb2   :  { %v394_v53 = vsel %vm378_vm13, %v392_v47, %v374_v7  ;;  %v395_v30 = vsel %vm379_vm5, %v392_v47, %v375_v8  ;;  %v396_v33 = vsel %vm380_vm15, %v392_v47, %v376_v9  ;;  %v397_v38 = vsel %vm381_vm8, %v392_v47, %v377_v50 }
  0xb3   :  { %v398_v19 = vmul.f32 %v394_v53, %v232_v0  ;;  %v399_v39 = vmul.f32 %v395_v30, %v233_v11  ;;  %v400_v41 = vmul.f32 %v396_v33, %v234_v12  ;;  %v401_v20 = vmul.f32 %v397_v38, %v235_v25 }
  0xb4   :  { %v144_v45 = vsel %vm847_vm12, %v1203_v42, %v1202_v23  ;;  %v145_v22 = vsel %vm851_vm14, %v1205_v57, %v1204_v58  ;;  %vm1067_vm0 = vcmp.eq.s32.totalorder %v1209_v21, 1  ;;  %vm1212_vm1 = vnez %v1154_v37 }
  0xb5   :  { %v404_v36 = vadd.f32 %v649_v18, %v398_v19  ;;  %v405_v54 = vadd.f32 %v649_v18, %v399_v39  ;;  %v406_v60 = vadd.f32 %v649_v18, %v400_v41  ;;  %v407_v59 = vadd.f32 %v649_v18, %v401_v20 }
  0xb6   :  { %v1213_v14 = vsel %vm1212_vm1, %v730_v63, %v733_v1  ;;  %v1214_v15 = vsel %vm1212_vm1, %v744_v4, %v747_v5  ;;  %vm1215_vm12 = vnez %v1162_v28  ;;  %vm1216_vm14 = vnez %v1156_v40 }
  0xb7   :  { %v146_v55 = vsel %vm1215_vm12, %v1214_v15, %v1213_v14  ;;  %v1217_v10 = vsel %vm1216_vm14, %v730_v63, %v733_v1  ;;  %v1218_v18 = vsel %vm1216_vm14, %v744_v4, %v747_v5  ;;  %vm1219_vm6 = vnez %v1164_v29 }
  0xb8   :  { %v147_v0 = vsel %vm1219_vm6, %v1218_v18, %v1217_v10  ;;  %v1220_v37 = vand.u32 1, %v572_v16  ;;  %v1223_v28 = vand.u32 1, %v574_v17  ;;  %v152_v40 = vsel %vm1061_vm2, %v144_v45, %v959_v61 }
  0xb9   :  { %vm408_vm3 = vcmp.le.f32.partialorder %v404_v36, 0.9  ;;  %vm409_vm11 = vcmp.le.f32.partialorder %v405_v54, 0.9  ;;  %vm410_vm4 = vcmp.le.f32.partialorder %v406_v60, 0.9  ;;  %v153_v16 = vsel %vm1067_vm0, %v145_v22, %v973_v2 }
  0xba   :  { %vm1101_vm8 = vcmp.eq.s32.totalorder %v1220_v37, 1  ;;  %vm1107_vm10 = vcmp.eq.s32.totalorder %v1223_v28, 1  ;;  %vm411_vm13 = vcmp.le.f32.partialorder %v407_v59, 0.9  ;;  %v412_v63 = vmul.f32 0.13, %v404_v36 }
  0xbb   :  { %v413_v1 = vmul.f32 0.13, %v405_v54  ;;  %v154_v17 = vsel %vm1101_vm8, %v146_v55, %v987_v3  ;;  %v155_v4 = vsel %vm1107_vm10, %v147_v0, %v1001_v49  ;;  %v414_v5 = vmul.f32 0.13, %v406_v60 }
  0xbc   :  { %v415_v29 = vmul.f32 0.13, %v407_v59  ;;  %v425_v61 = vstv %s1136_s4  ;;  %v416_v25 = vsel %vm408_vm3, %v404_v36, %v412_v63 }
  0xbd   :  { %v417_v27 = vsel %vm409_vm11, %v405_v54, %v413_v1  ;;  %v418_v2 = vsel %vm410_vm4, %v406_v60, %v414_v5  ;;  %v420_v26 = vmul.f32 %v416_v25, %v152_v40 }
  0xbe   :  { %v419_v31 = vsel %vm411_vm13, %v407_v59, %v415_v29  ;;  %v421_v32 = vmul.f32 %v417_v27, %v153_v16  ;;  %v422_v44 = vmul.f32 %v418_v2, %v154_v17 }
  0xbf   :  { %v423_v46 = vmul.f32 %v419_v31, %v155_v4  ;;  %v426_v34 = vadd.f32 %v425_v61, %v420_v26 }
  0xc0   :  { %v427_v3 = vadd.f32 %v425_v61, %v421_v32  ;;  %v428_v51 = vadd.f32 %v425_v61, %v422_v44 }
  0xc1   :  { %v429_v43 = vadd.f32 %v425_v61, %v423_v46  ;;  %vm430_vm5 = vcmp.le.f32.partialorder %v426_v34, 0.708  ;;  %v434_v49 = vmul.f32 0.13, %v426_v34 }
  0xc2   :  { %vm431_vm15 = vcmp.le.f32.partialorder %v427_v3, 0.708  ;;  %vm432_vm7 = vcmp.le.f32.partialorder %v428_v51, 0.708  ;;  %v435_v13 = vmul.f32 0.13, %v427_v3 }
  0xc3   :  { %vm433_vm9 = vcmp.le.f32.partialorder %v429_v43, 0.708  ;;  %v436_v48 = vmul.f32 0.13, %v428_v51  ;;  %v437_v52 = vmul.f32 0.13, %v429_v43  ;;  %v438_v62 = vsel %vm430_vm5, %v426_v34, %v434_v49 }
  0xc4   :  { %v439_v6 = vsel %vm431_vm15, %v427_v3, %v435_v13 }
  0xc5   :  { %v440_v47 = vsel %vm432_vm7, %v428_v51, %v436_v48  ;;  %v441_v7 = vsel %vm433_vm9, %v429_v43, %v437_v52  ;;  %v446_v8 = vcombine.low %v438_v62, %v439_v6 }
  0xc6   :  { %v447_v9 = vcombine.low %v440_v47, %v441_v7 }
  0xc7   :  { %450 = vst [vmem:[%s1137_s5] sm:$0xff] %v446_v8 }
  0xc8   :  { %451 = vst [vmem:[%s1137_s5 + $0x8] sm:$0xff] %v447_v9 }
  0xc9   :  { %456 = vsyncpa [#allocation5], 1 }
  0xca   :  { %457 = vsyncpa [#allocation7], 1 }

</bundles_post_ra>
